<compile_context>
chip_gen: v7x
topology: tpu7x:2x2x1
jax: 0.10.0
libtpu: 0.0.40
codegen_flags: <defaults>
</compile_context>

<pallas_src>
import jax
import jax.numpy as jnp
from jax import lax
from jax.experimental import pallas as pl
from jax.experimental.pallas import tpu as pltpu

LN_EPS = 1e-5   # torch.nn.LayerNorm default eps


def _round_up(a, b):
    return ((a + b - 1) // b) * b


def _joint_predictor_kernel(x_ref, w1_ref, b1_ref, g_ref, be_ref,
                            w2_ref, b2_ref, o_ref):
    """Fused Linear -> LayerNorm -> ReLU -> Linear on one row tile."""
    # joint linear: [T, 2*in] @ [2*in, hid]  (f32 accumulate on the MXU)
    h = (jnp.dot(x_ref[...], w1_ref[...], preferred_element_type=jnp.float32)
         + b1_ref[...])                                              # (T, hid) f32
    # LayerNorm over the feature (lane) axis; biased variance (torch semantics)
    mean = jnp.mean(h, axis=-1, keepdims=True)
    var = jnp.mean(jnp.square(h - mean), axis=-1, keepdims=True)
    hn = (h - mean) * lax.rsqrt(var + LN_EPS)
    hn = hn * g_ref[...] + be_ref[...]
    # ReLU
    hn = jnp.maximum(hn, 0.0)
    # output linear, stored directly at the real (narrow) output width
    o_ref[...] = (jnp.dot(hn.astype(w2_ref.dtype), w2_ref[...],
                          preferred_element_type=jnp.float32)
                  + b2_ref[...]).astype(o_ref.dtype)


def batch_joint_predictor(x_batch, params, *, tile_rows=8192):
    """params = (w1[2*in,hid], b1[hid], gamma[hid], beta[hid], w2[hid,out], b2[out])."""
    w1, b1, gamma, beta, w2, b2 = params
    two_in = w1.shape[0]
    hidden = w1.shape[1]
    out_dim = w2.shape[1]

    # --- glue: pairwise joint rows, built once as a single bf16 stream.
    #     One bf16 cast per sequence + one row-concat; no f32 [N, 2*in]
    #     intermediate and no second cast pass over the whole stream. ---
    # TODO(synk): a single-read version (one stacked [sum L_i, in] bf16 array
    # with scalar-prefetched per-sequence boundaries, reading rows i and i+1
    # in-kernel) would halve input HBM bytes further; not worth the
    # data-dependent indexing at these feature sizes.
    pairs = []
    for x in x_batch:
        if x.shape[0] >= 2:
            xb = x.astype(jnp.bfloat16)
            pairs.append(jnp.concatenate([xb[:-1], xb[1:]], axis=1))
    if not pairs:
        # degenerate batch: every sequence has length <= 1
        return jnp.zeros((0, out_dim), jnp.float32)
    x_pair = pairs[0] if len(pairs) == 1 else jnp.concatenate(pairs, axis=0)
    n = x_pair.shape[0]

    # --- parameters: bf16 MXU operands, f32 bias / LayerNorm params ---
    w1b = w1.astype(jnp.bfloat16)                          # (2*in, hidden)
    w2b = w2.astype(jnp.bfloat16)                          # (hidden, out_dim)
    b1r = b1.reshape(1, -1).astype(jnp.float32)
    gr = gamma.reshape(1, -1).astype(jnp.float32)
    ber = beta.reshape(1, -1).astype(jnp.float32)
    b2r = b2.reshape(1, -1).astype(jnp.float32)

    # --- row tiling: large tiles (amortize ~0.35 us/step overhead), multiple
    #     of 16 (bf16 sublane packing), clamped so tiny inputs run as a single
    #     grid step.  At 8192 rows the working set is ~1.5 MiB of VMEM. ---
    tile = min(max(tile_rows, 16), _round_up(n, 16))
    tile = _round_up(tile, 16)
    n_pad = _round_up(n, tile)
    if n_pad != n:
        x_pair = jnp.pad(x_pair, ((0, n_pad - n), (0, 0)))
    num_tiles = n_pad // tile

    cost = pl.CostEstimate(
        flops=2 * n_pad * (two_in * hidden + hidden * out_dim),
        transcendentals=n_pad,  # one rsqrt per row (LayerNorm)
        bytes_accessed=(n_pad * two_in * 2                 # bf16 joint stream
                        + n_pad * out_dim * 4              # f32 output
                        + (two_in * hidden + hidden * out_dim) * 2
                        + (3 * hidden + out_dim) * 4))

    out = pl.pallas_call(
        _joint_predictor_kernel,
        out_shape=jax.ShapeDtypeStruct((n_pad, out_dim), jnp.float32),
        grid_spec=pltpu.PrefetchScalarGridSpec(
            num_scalar_prefetch=0,
            grid=(num_tiles,),
            in_specs=[
                pl.BlockSpec((tile, two_in), lambda i: (i, 0)),     # joint rows
                pl.BlockSpec((two_in, hidden), lambda i: (0, 0)),   # w1
                pl.BlockSpec((1, hidden), lambda i: (0, 0)),        # b1
                pl.BlockSpec((1, hidden), lambda i: (0, 0)),        # gamma
                pl.BlockSpec((1, hidden), lambda i: (0, 0)),        # beta
                pl.BlockSpec((hidden, out_dim), lambda i: (0, 0)),  # w2
                pl.BlockSpec((1, out_dim), lambda i: (0, 0)),       # b2
            ],
            out_specs=pl.BlockSpec((tile, out_dim), lambda i: (i, 0)),
        ),
        compiler_params=pltpu.CompilerParams(
            dimension_semantics=("parallel",)),  # independent rows -> both v7x TCs
        cost_estimate=cost,
    )(x_pair, w1b, b1r, gr, ber, w2b, b2r)

    return out[:n]


def _reference(x_batch, params, *, emulate_bf16=False):
    """Torch-equivalent forward in plain JAX.

    With emulate_bf16=True the MXU operands are rounded to bf16 exactly like
    the kernel does (math stays f32), giving a bit-level-comparable reference.
    """
    w1, b1, gamma, beta, w2, b2 = params
    joints = [jnp.concatenate([x[:-1], x[1:]], axis=1) for x in x_batch
              if x.shape[0] >= 2]
    x = jnp.concatenate(joints, axis=0)
    if emulate_bf16:
        x = x.astype(jnp.bfloat16).astype(jnp.float32)
        w1 = w1.astype(jnp.bfloat16).astype(jnp.float32)
        w2 = w2.astype(jnp.bfloat16).astype(jnp.float32)
    h = x @ w1 + b1
    mu = h.mean(-1, keepdims=True)
    var = ((h - mu) ** 2).mean(-1, keepdims=True)
    h = (h - mu) / jnp.sqrt(var + LN_EPS) * gamma + beta
    h = jnp.maximum(h, 0.0)
    if emulate_bf16:
        h = h.astype(jnp.bfloat16).astype(jnp.float32)
    return h @ w2 + b2


if __name__ == "__main__":
    input_dim, hidden_dim, output_dim = 16, 32, 8

    key = jax.random.PRNGKey(0)
    k = jax.random.split(key, 6)

    # deterministic synthetic parameters (shapes match the module's __init__)
    w1 = jax.random.normal(k[0], (2 * input_dim, hidden_dim), jnp.float32) * 0.1
    b1 = jax.random.normal(k[1], (hidden_dim,), jnp.float32) * 0.1
    gamma = jnp.ones((hidden_dim,), jnp.float32)   # LayerNorm default init
    beta = jnp.zeros((hidden_dim,), jnp.float32)
    w2 = jax.random.normal(k[2], (hidden_dim, output_dim), jnp.float32) * 0.1
    b2 = jax.random.normal(k[3], (output_dim,), jnp.float32) * 0.1
    params = (w1, b1, gamma, beta, w2, b2)

    # a "batch" of two sequences of different lengths
    x_batch = [
        jax.random.normal(k[4], (9, input_dim), jnp.float32),
        jax.random.normal(k[5], (17, input_dim), jnp.float32),
    ]

    out = batch_joint_predictor(x_batch, params)
    out = jax.block_until_ready(out)
    assert out.shape == (8 + 16, output_dim), out.shape

    # tight check against a reference with identical bf16 operand rounding
    ref_bits = _reference(x_batch, params, emulate_bf16=True)
    assert jnp.allclose(out, ref_bits, atol=5e-3, rtol=5e-3), \
        float(jnp.max(jnp.abs(out - ref_bits)))

    # loose check against the full-f32 torch-equivalent reference
    ref_f32 = _reference(x_batch, params)
    assert jnp.allclose(out, ref_f32, atol=1.5e-1, rtol=1.5e-1), \
        float(jnp.max(jnp.abs(out - ref_f32)))

    # degenerate-batch guard (all sequences of length <= 1)
    empty = batch_joint_predictor([x_batch[0][:1]], params)
    assert empty.shape == (0, output_dim), empty.shape

    print("KERNEL_OK")
</pallas_src>

<mosaic_0001>
module attributes {stable_mosaic.version = 11 : i64} {
  func.func @_joint_predictor_kernel(%arg0: i32, %arg1: memref<32x32xbf16, #tpu.memory_space<vmem>>, %arg2: memref<32x32xbf16, #tpu.memory_space<vmem>>, %arg3: memref<1x32xf32, #tpu.memory_space<vmem>>, %arg4: memref<1x32xf32, #tpu.memory_space<vmem>>, %arg5: memref<1x32xf32, #tpu.memory_space<vmem>>, %arg6: memref<32x8xbf16, #tpu.memory_space<vmem>>, %arg7: memref<1x8xf32, #tpu.memory_space<vmem>>, %arg8: memref<32x8xf32, #tpu.memory_space<vmem>>) attributes {dimension_semantics = [#tpu.dimension_semantics<parallel>], iteration_bounds = array<i64: 1>, scalar_prefetch = 0 : i64, scratch_operands = 0 : i64, tpu.core_type = #tpu.core_type<tc>, window_params = [{transform_indices = @transform_0, window_bounds = array<i64: 32, 32>}, {pipeline_mode = #tpu.pipeline_mode<synchronous>, transform_indices = @transform_1, window_bounds = array<i64: 32, 32>}, {pipeline_mode = #tpu.pipeline_mode<synchronous>, transform_indices = @transform_2, window_bounds = array<i64: 1, 32>}, {pipeline_mode = #tpu.pipeline_mode<synchronous>, transform_indices = @transform_3, window_bounds = array<i64: 1, 32>}, {pipeline_mode = #tpu.pipeline_mode<synchronous>, transform_indices = @transform_4, window_bounds = array<i64: 1, 32>}, {pipeline_mode = #tpu.pipeline_mode<synchronous>, transform_indices = @transform_5, window_bounds = array<i64: 32, 8>}, {pipeline_mode = #tpu.pipeline_mode<synchronous>, transform_indices = @transform_6, window_bounds = array<i64: 1, 8>}, {transform_indices = @transform_7, window_bounds = array<i64: 32, 8>}]} {
    %c0 = arith.constant 0 : index
    %c0_0 = arith.constant 0 : index
    %0 = vector.load %arg1[%c0, %c0_0] : memref<32x32xbf16, #tpu.memory_space<vmem>>, vector<32x32xbf16>
    %c0_1 = arith.constant 0 : index
    %c0_2 = arith.constant 0 : index
    %1 = vector.load %arg2[%c0_1, %c0_2] : memref<32x32xbf16, #tpu.memory_space<vmem>>, vector<32x32xbf16>
    %cst = arith.constant dense<0.000000e+00> : vector<32x32xf32>
    %2 = tpu.matmul %0, %1, %cst {dimension_numbers = #tpu.dot_dimension_numbers<[1], [0], [0], [1], [0, 0, 1, 1], [], []>} : vector<32x32xbf16>, vector<32x32xbf16>, vector<32x32xf32> -> vector<32x32xf32>
    %c0_3 = arith.constant 0 : index
    %c0_4 = arith.constant 0 : index
    %3 = vector.load %arg3[%c0_3, %c0_4] : memref<1x32xf32, #tpu.memory_space<vmem>>, vector<1x32xf32>
    %4 = vector.broadcast %3 : vector<1x32xf32> to vector<32x32xf32>
    %5 = arith.addf %2, %4 : vector<32x32xf32>
    %cst_5 = arith.constant dense<0.000000e+00> : vector<32xf32>
    %6 = vector.multi_reduction <add>, %5, %cst_5 [1] : vector<32x32xf32> to vector<32xf32>
    %7 = vector.shape_cast %6 : vector<32xf32> to vector<32x1xf32>
    %cst_6 = arith.constant 3.200000e+01 : f32
    %8 = vector.broadcast %cst_6 : f32 to vector<32x1xf32>
    %9 = arith.divf %7, %8 : vector<32x1xf32>
    %10 = vector.broadcast %9 : vector<32x1xf32> to vector<32x32xf32>
    %11 = arith.subf %5, %10 : vector<32x32xf32>
    %12 = arith.mulf %11, %11 : vector<32x32xf32>
    %cst_7 = arith.constant dense<0.000000e+00> : vector<32xf32>
    %13 = vector.multi_reduction <add>, %12, %cst_7 [1] : vector<32x32xf32> to vector<32xf32>
    %14 = vector.shape_cast %13 : vector<32xf32> to vector<32x1xf32>
    %cst_8 = arith.constant 3.200000e+01 : f32
    %15 = vector.broadcast %cst_8 : f32 to vector<32x1xf32>
    %16 = arith.divf %14, %15 : vector<32x1xf32>
    %17 = vector.broadcast %9 : vector<32x1xf32> to vector<32x32xf32>
    %18 = arith.subf %5, %17 : vector<32x32xf32>
    %cst_9 = arith.constant 9.99999974E-6 : f32
    %19 = vector.broadcast %cst_9 : f32 to vector<32x1xf32>
    %20 = arith.addf %16, %19 : vector<32x1xf32>
    %21 = math.rsqrt %20 : vector<32x1xf32>
    %22 = vector.broadcast %21 : vector<32x1xf32> to vector<32x32xf32>
    %23 = arith.mulf %18, %22 : vector<32x32xf32>
    %c0_10 = arith.constant 0 : index
    %c0_11 = arith.constant 0 : index
    %24 = vector.load %arg4[%c0_10, %c0_11] : memref<1x32xf32, #tpu.memory_space<vmem>>, vector<1x32xf32>
    %25 = vector.broadcast %24 : vector<1x32xf32> to vector<32x32xf32>
    %26 = arith.mulf %23, %25 : vector<32x32xf32>
    %c0_12 = arith.constant 0 : index
    %c0_13 = arith.constant 0 : index
    %27 = vector.load %arg5[%c0_12, %c0_13] : memref<1x32xf32, #tpu.memory_space<vmem>>, vector<1x32xf32>
    %28 = vector.broadcast %27 : vector<1x32xf32> to vector<32x32xf32>
    %29 = arith.addf %26, %28 : vector<32x32xf32>
    %cst_14 = arith.constant 0.000000e+00 : f32
    %30 = vector.broadcast %cst_14 : f32 to vector<32x32xf32>
    %31 = arith.maximumf %29, %30 : vector<32x32xf32>
    %32 = arith.truncf %31 : vector<32x32xf32> to vector<32x32xbf16>
    %c0_15 = arith.constant 0 : index
    %c0_16 = arith.constant 0 : index
    %33 = vector.load %arg6[%c0_15, %c0_16] : memref<32x8xbf16, #tpu.memory_space<vmem>>, vector<32x8xbf16>
    %cst_17 = arith.constant dense<0.000000e+00> : vector<32x8xf32>
    %34 = tpu.matmul %32, %33, %cst_17 {dimension_numbers = #tpu.dot_dimension_numbers<[1], [0], [0], [1], [0, 0, 1, 1], [], []>} : vector<32x32xbf16>, vector<32x8xbf16>, vector<32x8xf32> -> vector<32x8xf32>
    %c0_18 = arith.constant 0 : index
    %c0_19 = arith.constant 0 : index
    %35 = vector.load %arg7[%c0_18, %c0_19] : memref<1x8xf32, #tpu.memory_space<vmem>>, vector<1x8xf32>
    %36 = vector.broadcast %35 : vector<1x8xf32> to vector<32x8xf32>
    %37 = arith.addf %34, %36 : vector<32x8xf32>
    %c0_20 = arith.constant 0 : index
    %c0_21 = arith.constant 0 : index
    %38 = vector.load %arg8[%c0_20, %c0_21] : memref<32x8xf32, #tpu.memory_space<vmem>>, vector<32x8xf32>
    tpu.vector_store %arg8[%c0_20, %c0_21], %37 {strides = array<i32>} : memref<32x8xf32, #tpu.memory_space<vmem>>, vector<32x8xf32>,
    return
  }
  func.func @transform_0(%arg0: i32) -> (i32, i32) {
    %c0_i32 = arith.constant 0 : i32
    %c0_i32_0 = arith.constant 0 : i32
    return %arg0, %c0_i32 : i32, i32
  }
  func.func @transform_1(%arg0: i32) -> (i32, i32) {
    %c0_i32 = arith.constant 0 : i32
    %c0_i32_0 = arith.constant 0 : i32
    %c0_i32_1 = arith.constant 0 : i32
    return %c0_i32, %c0_i32_0 : i32, i32
  }
  func.func @transform_2(%arg0: i32) -> (i32, i32) {
    %c0_i32 = arith.constant 0 : i32
    %c0_i32_0 = arith.constant 0 : i32
    %c0_i32_1 = arith.constant 0 : i32
    return %c0_i32, %c0_i32_0 : i32, i32
  }
  func.func @transform_3(%arg0: i32) -> (i32, i32) {
    %c0_i32 = arith.constant 0 : i32
    %c0_i32_0 = arith.constant 0 : i32
    %c0_i32_1 = arith.constant 0 : i32
    return %c0_i32, %c0_i32_0 : i32, i32
  }
  func.func @transform_4(%arg0: i32) -> (i32, i32) {
    %c0_i32 = arith.constant 0 : i32
    %c0_i32_0 = arith.constant 0 : i32
    %c0_i32_1 = arith.constant 0 : i32
    return %c0_i32, %c0_i32_0 : i32, i32
  }
  func.func @transform_5(%arg0: i32) -> (i32, i32) {
    %c0_i32 = arith.constant 0 : i32
    %c0_i32_0 = arith.constant 0 : i32
    %c0_i32_1 = arith.constant 0 : i32
    return %c0_i32, %c0_i32_0 : i32, i32
  }
  func.func @transform_6(%arg0: i32) -> (i32, i32) {
    %c0_i32 = arith.constant 0 : i32
    %c0_i32_0 = arith.constant 0 : i32
    %c0_i32_1 = arith.constant 0 : i32
    return %c0_i32, %c0_i32_0 : i32, i32
  }
  func.func @transform_7(%arg0: i32) -> (i32, i32) {
    %c0_i32 = arith.constant 0 : i32
    %c0_i32_0 = arith.constant 0 : i32
    return %arg0, %c0_i32 : i32, i32
  }
}

</mosaic_0001>

<bundles_post_ra>
// kernel: tpu_custom_call.1
= control target key start
LH: loop header
LB: loop body
LE: loop exit
PB: predicated region body
PF: predicated region fallthrough
CT: control target
= control target key end

     0   :  { %12 = vsyncpa [#allocation3], 0  ;;  %s382_s24 = smov [#allocation2]   ;;  %s485_s0 = inlined_call_operand.vmem [shape: bf16[32,32], index: 0, kind: input, shape index: {}]   ;;  %s486_s1 = inlined_call_operand.hbm [shape: bf16[32,32], index: 1, kind: input, shape index: {}]   ;;  %s487_s2 = inlined_call_operand.vmem [shape: f32[1,32], index: 2, kind: input, shape index: {}]   ;;  %s488_s3 = inlined_call_operand.vmem [shape: f32[1,32], index: 3, kind: input, shape index: {}]   ;;  %s489_s4 = inlined_call_operand.vmem [shape: f32[1,32], index: 4, kind: input, shape index: {}]   ;;  %s490_s5 = inlined_call_operand.vmem [shape: bf16[32,8], index: 5, kind: input, shape index: {}]   ;;  %s491_s6 = inlined_call_operand.vmem [shape: f32[1,8], index: 6, kind: input, shape index: {}]   ;;  %s492_s7 = inlined_call_operand.vmem [shape: f32[32,8], index: 7, kind: output, shape index: {}]  }
   0x1   :  { %s20_s25 = sshll.u32 %s382_s24, 4  ;;  %s358_s28 = scalar_lea.hbm %s486_s1, 256  ;;  %s21_s25 = int_to_ptr.vmem [resolvable:$true] %s20_s25 }
   0x2   :  { %p359_p0 = scmp.ne.s32.totalorder %s486_s1, %s358_s28  ;;  %p362_p1 = scmp.lt.u32.totalorder %s358_s28, %s486_s1 }
   0x4   :  { %p364_p2 = pnand %p362_p1, %p359_p0 }
   0x6   :  { %367 = shalt.err (!%p364_p2)
}
   0x7   :  { %s368_s10 = scalar_lea.vmem %s21_s25, 256  ;;  %p373_p4 = scmp.lt.s32.totalorder %s21_s25, %s21_s25 }
   0x8   :  { %p369_p3 = scmp.ne.s32.totalorder %s21_s25, %s368_s10  ;;  %p374_p5 = scmp.lt.s32.totalorder %s368_s10, %s368_s10 }
   0xa   :  { %p375_p6 = por %p374_p5, %p373_p4 }
   0xc   :  { %p376_p7 = pnand %p375_p6, %p369_p3 }
   0xe   :  { %379 = shalt.err (!%p376_p7)
}
   0xf   :  { %s383_s11 = smov 64   ;;  %s384_s12 = smov 4  }
  0x10   :  { %26 = dma.hbm_to_vmem [thread:$0]  %s486_s1, 256, %s21_s25, [#allocation3], %s383_s11, %s383_s11, %s384_s12  }
  0x11   :  { %380 = dma.done.wait [#allocation3], 256  }
  0x12   :  { %381 = vsyncadd [#allocation3], 4294967040  ;;  %v344_v0 = vld [vmem:[#allocation2] sm:$0xff]   ;;  %v345_v1 = vld [vmem:[#allocation2 + $0x8] sm:$0xff]   ;;  %vm78_vm0 = vcmask 261120   ;;  %vm293_vm1 = vcmask 64512  }
  0x13   :  { %325 = vmatprep.subr.bf16.mxu0 %v344_v0  ;;  %v346_v2 = vld [vmem:[%s485_s0] sm:$0xff]   ;;  %v347_v3 = vld [vmem:[%s485_s0 + $0x8] sm:$0xff]  }
  0x14   :  { %326 = vmatpush3.bf16.msra.mxu0 %v344_v0  ;;  %329 = vmatprep.mubr.msk.bf16.mxu0 %vm78_vm0, %v346_v2  ;;  %v303_v4 = vld [vmem:[%s487_s2] ss:$0 sm:$0xff]  ;;  %v349_v38 = vld [vmem:[%s490_s5 + $0x8] sm:$0xff]  }
  0x15   :  { %327 = vmatprep.subr.bf16.mxu0 %v345_v1  ;;  %v348_v37 = vld [vmem:[%s490_s5] sm:$0xff]  }
  0x16   :  { %333 = vmatprep.subr.bf16.mxu1 %v348_v37  ;;  %v310_v52 = vld [vmem:[%s488_s3] ss:$0 sm:$0xff] }
  0x17   :  { %334 = vmatpush3.bf16.msra.mxu1 %v348_v37  ;;  %v311_v56 = vld [vmem:[%s489_s4] ss:$0 sm:$0xff] }
  0x18   :  { %328 = vmatpush3.bf16.msra.mxu0 %v345_v1  ;;  %335 = vmatprep.subr.bf16.mxu1 %v349_v38 }
  0x1b   :  { %330 = vmatmul.mubr.msk.bf16.vlgmr.msra.gmra.mrb[0].mxu0 %vm78_vm0, %v347_v3  ;;  %336 = vmatpush3.bf16.msra.mxu1 %v349_v38 }
  0xee   :  { %v331_v5 = vpop.f32.mrb[0].mxu0 }
  0xef   :  { %v128_v6 = vadd.f32 %v331_v5, %v303_v4  ;;  %v119_v7 = vpop.f32.mrb[1].mxu0 }
  0xf0   :  { %v120_v8 = vadd.f32 %v303_v4, %v119_v7  ;;  %v332_v9 = vpop.f32.mrb[2].mxu0 }
  0xf1   :  { %v131_v10 = vadd.f32 %v332_v9, %v303_v4  ;;  %v122_v11 = vpop.f32.mrb[3].mxu0  ;;  %v140_v12 = vsel %vm78_vm0, %v128_v6, 0.0 }
  0xf2   :  { %v123_v13 = vadd.f32 %v303_v4, %v122_v11  ;;  %141 = vadd.xlane.f32.xlu1 %v140_v12  ;;  %v134_v14 = vsel %vm78_vm0, %v120_v8, 0.0  ;;  %v312_v11 = vld [vmem:[%s491_s6] ss:$0 sm:$0xff] }
  0xf3   :  { %135 = vadd.xlane.f32.xlu0 %v134_v14  ;;  %v143_v15 = vsel %vm78_vm0, %v131_v10, 0.0 }
  0xf4   :  { %v137_v16 = vsel %vm78_vm0, %v123_v13, 0.0 }
  0xf6   :  { %144 = vadd.xlane.f32.xlu1 %v143_v15 }
  0xf7   :  { %138 = vadd.xlane.f32.xlu0 %v137_v16 }
 0x17f   :  { %v142_v17 = vpop.xlane.xlu1 %141 }
 0x180   :  { %v149_v18 = vmul.f32 0.03125, %v142_v17  ;;  %v136_v19 = vpop.xlane.xlu0 %135 }
 0x181   :  { %v147_v20 = vmul.f32 0.03125, %v136_v19 }
 0x182   :  { %v153_v21 = vsub.f32 %v128_v6, %v149_v18 }
 0x183   :  { %v151_v22 = vsub.f32 %v120_v8, %v147_v20  ;;  %v145_v23 = vpop.xlane.xlu1 %144 }
 0x184   :  { %v150_v24 = vmul.f32 0.03125, %v145_v23  ;;  %v139_v25 = vpop.xlane.xlu0 %138  ;;  %v157_v31 = vmul.f32 %v153_v21, %v153_v21 }
 0x185   :  { %v148_v26 = vmul.f32 0.03125, %v139_v25  ;;  %v155_v27 = vmul.f32 %v151_v22, %v151_v22 }
 0x186   :  { %v154_v28 = vsub.f32 %v131_v10, %v150_v24  ;;  %v165_v33 = vsel %vm78_vm0, %v157_v31, 0.0 }
 0x187   :  { %v152_v29 = vsub.f32 %v123_v13, %v148_v26  ;;  %v159_v30 = vsel %vm78_vm0, %v155_v27, 0.0 }
 0x188   :  { %160 = vadd.xlane.f32.xlu0 %v159_v30  ;;  %v158_v35 = vmul.f32 %v154_v28, %v154_v28 }
 0x189   :  { %v156_v32 = vmul.f32 %v152_v29, %v152_v29 }
 0x18a   :  { %v168_v36 = vsel %vm78_vm0, %v158_v35, 0.0 }
 0x18b   :  { %v162_v34 = vsel %vm78_vm0, %v156_v32, 0.0 }
 0x18c   :  { %166 = vadd.xlane.f32.xlu0 %v165_v33  ;;  %163 = vadd.xlane.f32.xlu1 %v162_v34 }
 0x190   :  { %169 = vadd.xlane.f32.xlu1 %v168_v36 }
 0x215   :  { %v161_v39 = vpop.xlane.xlu0 %160 }
 0x216   :  { %v171_v40 = vmul.f32 0.03125, %v161_v39 }
 0x218   :  { %v175_v41 = vadd.f32 1e-05, %v171_v40 }
 0x219   :  { %v164_v42 = vpop.xlane.xlu1 %163  ;;  %v167_v43 = vpop.xlane.xlu0 %166 }
 0x21a   :  { %350 = vrsqrt.f32 %v175_v41  ;;  %v172_v44 = vmul.f32 0.03125, %v164_v42  ;;  %v173_v45 = vmul.f32 0.03125, %v167_v43 }
 0x21c   :  { %v176_v46 = vadd.f32 1e-05, %v172_v44  ;;  %v177_v47 = vadd.f32 1e-05, %v173_v45 }
 0x21d   :  { %v170_v48 = vpop.xlane.xlu1 %169 }
 0x21e   :  { %352 = vrsqrt.f32 %v176_v46  ;;  %v174_v49 = vmul.f32 0.03125, %v170_v48 }
 0x21f   :  { %354 = vrsqrt.f32 %v177_v47 }
 0x220   :  { %v178_v50 = vadd.f32 1e-05, %v174_v49 }
 0x222   :  { %356 = vrsqrt.f32 %v178_v50 }
 0x224   :  { %v351_v51 = vpop.eup %350 }
 0x225   :  { %v183_v53 = vmul.f32 %v351_v51, %v151_v22 }
 0x227   :  { %v194_v54 = vmul.f32 %v310_v52, %v183_v53 }
 0x228   :  { %v353_v55 = vpop.eup %352 }
 0x229   :  { %v355_v57 = vpop.eup %354  ;;  %v184_v58 = vmul.f32 %v353_v55, %v152_v29  ;;  %v205_v61 = vadd.f32 %v311_v56, %v194_v54 }
 0x22a   :  { %v185_v59 = vmul.f32 %v355_v57, %v153_v21 }
 0x22b   :  { %v195_v60 = vmul.f32 %v310_v52, %v184_v58  ;;  %v209_v2 = vmax.f32 %v205_v61, 0.0 }
 0x22c   :  { %v357_v62 = vpop.eup %356  ;;  %v196_v63 = vmul.f32 %v310_v52, %v185_v59 }
 0x22d   :  { %v186_v0 = vmul.f32 %v357_v62, %v154_v28  ;;  %v206_v1 = vadd.f32 %v311_v56, %v195_v60 }
 0x22e   :  { %v207_v5 = vadd.f32 %v311_v56, %v196_v63 }
 0x22f   :  { %v210_v3 = vmax.f32 %v206_v1, 0.0  ;;  %v197_v4 = vmul.f32 %v310_v52, %v186_v0 }
 0x230   :  { %v211_v8 = vmax.f32 %v207_v5, 0.0 }
 0x231   :  { %v213_v6 = vpack.c.bf16 %v210_v3, %v209_v2  ;;  %v208_v7 = vadd.f32 %v311_v56, %v197_v4 }
 0x233   :  { %337 = vmatprep.mubr.msk.bf16.mxu1 %vm78_vm0, %v213_v6  ;;  %v212_v9 = vmax.f32 %v208_v7, 0.0 }
 0x235   :  { %v214_v10 = vpack.c.bf16 %v212_v9, %v211_v8 }
 0x237   :  { %338 = vmatmul.mubr.msk.bf16.vlgmr.msra.gmra.mrb[0].mxu1 %vm78_vm0, %v214_v10 }
 0x30a   :  { %v339_v12 = vpop.f32.mrb[0].mxu1 }
 0x30b   :  { %v287_v13 = vadd.f32 %v339_v12, %v312_v11  ;;  %v278_v14 = vpop.f32.mrb[1].mxu1 }
 0x30c   :  { %v279_v15 = vadd.f32 %v312_v11, %v278_v14  ;;  %v340_v16 = vpop.f32.mrb[2].mxu1 }
 0x30d   :  { %296 = vst.msk [vmem:[%s492_s7 + $0x10] sm:$0xff] %vm293_vm1, %v287_v13  ;;  %v290_v17 = vadd.f32 %v340_v16, %v312_v11  ;;  %v281_v18 = vpop.f32.mrb[3].mxu1 }
 0x30e   :  { %294 = vst.msk [vmem:[%s492_s7] sm:$0xff] %vm293_vm1, %v279_v15  ;;  %v282_v19 = vadd.f32 %v312_v11, %v281_v18 }
 0x30f   :  { %297 = vst.msk [vmem:[%s492_s7 + $0x18] sm:$0xff] %vm293_vm1, %v290_v17 }
 0x310   :  { %295 = vst.msk [vmem:[%s492_s7 + $0x8] sm:$0xff] %vm293_vm1, %v282_v19 }
 0x311   :  { %302 = vsyncpa [#allocation3], 1 }

</bundles_post_ra>
